<compile_context>
chip_gen: v7x
topology: tpu7x:2x2x1
jax: 0.10.0
libtpu: 0.0.40
codegen_flags: <defaults>
</compile_context>

<pallas_src>
import functools

import jax
import jax.numpy as jnp
from jax.experimental import pallas as pl
from jax.experimental.pallas import tpu as pltpu


def _tv_kernel(wmask_ref, x_ref, oh_ref, ow_ref, *, w, hw):
    """Partial TV sums for one (TC, H*W) slab of lane-dense image planes.

    wmask_ref: (1, HW) f32 — 0 at lanes whose "next lane" neighbour wraps to
               the next image row (col % W == W - 1), 1 elsewhere.
    x_ref:     (TC, HW) input tile (TC flattened image planes).
    oh_ref:    (1, 8, 128) f32 — sum of squared H-diffs for this block
               (scalar broadcast over the aligned tile).
    ow_ref:    (1, 8, 128) f32 — same for W-diffs.
    """
    x = x_ref[...].astype(jnp.float32)                       # (TC, HW)

    # Flattened pixel index along the lane axis (same for every plane).
    col = jax.lax.broadcasted_iota(jnp.int32, (1, hw), 1)

    # Vertical (H) neighbour: one image row (W lanes) ahead on the flat axis.
    # pltpu.roll follows jnp.roll semantics, so a non-negative shift of
    # hw - w puts x[(i + w) % hw] at lane i; wrapped tail lanes are invalid.
    xh = pltpu.roll(x, shift=hw - w, axis=1)
    dh = xh - x
    dh2 = jnp.where(col < (hw - w), dh * dh, 0.0)

    # Horizontal (W) neighbour: next lane; row-wrap lanes zeroed by wmask.
    xw = pltpu.roll(x, shift=hw - 1, axis=1)
    dw = xw - x
    dw2 = dw * dw * wmask_ref[...]

    # Sublane (VPU) reduce, then lane (XLU) reduce: one scalar per block.
    h_sum = jnp.sum(jnp.sum(dh2, axis=0, keepdims=True), axis=1, keepdims=True)
    w_sum = jnp.sum(jnp.sum(dw2, axis=0, keepdims=True), axis=1, keepdims=True)

    # Lane/sublane-aligned output blocks -> unmasked stores, tiny writeback.
    oh_ref[...] = jnp.broadcast_to(h_sum.reshape(1, 1, 1), (1, 8, 128))
    ow_ref[...] = jnp.broadcast_to(w_sum.reshape(1, 1, 1), (1, 8, 128))


def tv_loss(x, tv_loss_weight=1.0):
    """TV loss matching PyTorch TVLoss.forward. x: (B, C, H, W) -> f32 scalar."""
    B, C, H, W = x.shape
    if H < 2 or W < 2:
        # TODO(synk): H==1 / W==1 give count_h==0 / count_w==0 (div-by-zero in
        # the PyTorch original too); not supported by the kernel path.
        raise ValueError("tv_loss requires H >= 2 and W >= 2")

    BC = B * C
    HW = H * W
    itemsize = x.dtype.itemsize
    x2 = x.reshape(BC, HW)

    # ---- Tile sizing: ~4 MiB of f32 work per step, TC a multiple of 8. -----
    target_tile_bytes = 4 * 1024 * 1024
    tc = max(8, (target_tile_bytes // (HW * 4)) // 8 * 8)
    if BC >= 16:
        # Keep at least two grid steps so both v7x TensorCores get work.
        tc = min(tc, pl.cdiv(pl.cdiv(BC, 2), 8) * 8)
    tc = min(tc, pl.cdiv(BC, 8) * 8)
    bc_pad = pl.cdiv(BC, tc) * tc
    if bc_pad != BC:
        # Zero padding contributes exactly 0 to both partial sums.
        x2 = jnp.pad(x2, ((0, bc_pad - BC), (0, 0)))
    grid = bc_pad // tc

    # Lane mask for the W-direction diff: 0 where the "next lane" neighbour
    # wraps from the last column of one image row to the first of the next.
    wmask = jnp.ones((H, W), jnp.float32).at[:, W - 1].set(0.0).reshape(1, HW)

    # ---- VMEM budget (physical, (8,128)-padded tiles) & cost estimate. -----
    phys_rows = pl.cdiv(tc, 8) * 8
    phys_cols = pl.cdiv(HW, 128) * 128
    tile_in_bytes = phys_rows * phys_cols * itemsize
    tile_f32_bytes = phys_rows * phys_cols * 4
    # Double-buffered input + rolled copies / diffs / squares + slack.
    vmem_needed = 2 * tile_in_bytes + 6 * tile_f32_bytes + (2 << 20)
    # Cap below v7x's 64 MiB physical VMEM per TensorCore (headroom for
    # Mosaic internal scratch, the resident mask, and the output buffers).
    # TODO(synk): very large per-plane H*W can exceed this budget; that case
    # needs spatial tiling with halos rather than whole-plane lanes.
    vmem_limit = int(min(56 * 1024 * 1024, max(32 * 1024 * 1024, vmem_needed)))

    cost = pl.CostEstimate(
        flops=8 * BC * HW,
        transcendentals=0,
        bytes_accessed=int(x.size * itemsize + HW * 4 + grid * 2 * 8 * 128 * 4),
    )

    out_h, out_w = pl.pallas_call(
        functools.partial(_tv_kernel, w=W, hw=HW),
        out_shape=(
            jax.ShapeDtypeStruct((grid, 8, 128), jnp.float32),
            jax.ShapeDtypeStruct((grid, 8, 128), jnp.float32),
        ),
        grid_spec=pltpu.PrefetchScalarGridSpec(
            num_scalar_prefetch=0,
            grid=(grid,),
            in_specs=[
                pl.BlockSpec((1, HW), lambda i: (0, 0)),   # lane mask (resident)
                pl.BlockSpec((tc, HW), lambda i: (i, 0)),  # input tile
            ],
            out_specs=[
                pl.BlockSpec((1, 8, 128), lambda i: (i, 0, 0)),
                pl.BlockSpec((1, 8, 128), lambda i: (i, 0, 0)),
            ],
        ),
        compiler_params=pltpu.CompilerParams(
            dimension_semantics=("parallel",),  # disjoint output block per step
            vmem_limit_bytes=vmem_limit,
        ),
        cost_estimate=cost,
    )(wmask, x2)

    h_tv = jnp.sum(out_h[:, 0, 0])
    w_tv = jnp.sum(out_w[:, 0, 0])
    count_h = C * (H - 1) * W
    count_w = C * H * (W - 1)
    return tv_loss_weight * 2.0 * (h_tv / count_h + w_tv / count_w) / B


def tv_loss_ref(x, tv_loss_weight=1.0):
    """Pure-JAX reference (mirrors the PyTorch forward)."""
    B, C, H, W = x.shape
    xf = x.astype(jnp.float32)
    h_tv = jnp.sum((xf[:, :, 1:, :] - xf[:, :, : H - 1, :]) ** 2)
    w_tv = jnp.sum((xf[:, :, :, 1:] - xf[:, :, :, : W - 1]) ** 2)
    count_h = C * (H - 1) * W
    count_w = C * H * (W - 1)
    return tv_loss_weight * 2.0 * (h_tv / count_h + w_tv / count_w) / B


if __name__ == "__main__":
    key = jax.random.PRNGKey(0)
    B, C, H, W = 2, 4, 16, 16
    x = jax.random.normal(key, (B, C, H, W), dtype=jnp.float32)

    out = jax.block_until_ready(tv_loss(x, tv_loss_weight=1.0))
    ref = jax.block_until_ready(tv_loss_ref(x, tv_loss_weight=1.0))
    assert jnp.allclose(out, ref, rtol=1e-5, atol=1e-5), (out, ref)

    print("KERNEL_OK")
</pallas_src>

<mosaic_0001>
module attributes {stable_mosaic.version = 11 : i64} {
  func.func @_tv_kernel(%arg0: i32, %arg1: memref<1x256xf32, #tpu.memory_space<vmem>>, %arg2: memref<8x256xf32, #tpu.memory_space<vmem>>, %arg3: memref<1x8x128xf32, #tpu.memory_space<vmem>>, %arg4: memref<1x8x128xf32, #tpu.memory_space<vmem>>) attributes {dimension_semantics = [#tpu.dimension_semantics<parallel>], iteration_bounds = array<i64: 1>, scalar_prefetch = 0 : i64, scratch_operands = 0 : i64, tpu.core_type = #tpu.core_type<tc>, window_params = [{pipeline_mode = #tpu.pipeline_mode<synchronous>, transform_indices = @transform_0, window_bounds = array<i64: 1, 256>}, {transform_indices = @transform_1, window_bounds = array<i64: 8, 256>}, {transform_indices = @transform_2, window_bounds = array<i64: 1, 8, 128>}, {transform_indices = @transform_3, window_bounds = array<i64: 1, 8, 128>}]} {
    %c0 = arith.constant 0 : index
    %c0_0 = arith.constant 0 : index
    %0 = vector.load %arg2[%c0, %c0_0] : memref<8x256xf32, #tpu.memory_space<vmem>>, vector<8x256xf32>
    %1 = tpu.iota {dimensions = array<i32: 1>} : vector<1x256xi32>
    %c240_i32 = arith.constant 240 : i32
    %2 = tpu.dynamic_rotate %0 by %c240_i32 dim 1 : vector<8x256xf32>, i32 -> vector<8x256xf32>
    %3 = arith.subf %2, %0 : vector<8x256xf32>
    %c240_i32_1 = arith.constant 240 : i32
    %4 = vector.broadcast %c240_i32_1 : i32 to vector<1x256xi32>
    %5 = arith.cmpi slt, %1, %4 : vector<1x256xi32>
    %6 = arith.mulf %3, %3 : vector<8x256xf32>
    %cst = arith.constant 0.000000e+00 : f32
    %7 = vector.shape_cast %5 : vector<1x256xi1> to vector<1x256xi1>
    %8 = vector.broadcast %7 : vector<1x256xi1> to vector<8x256xi1>
    %9 = vector.broadcast %cst : f32 to vector<8x256xf32>
    %10 = arith.select %8, %6, %9 : vector<8x256xi1>, vector<8x256xf32>
    %c255_i32 = arith.constant 255 : i32
    %11 = tpu.dynamic_rotate %0 by %c255_i32 dim 1 : vector<8x256xf32>, i32 -> vector<8x256xf32>
    %12 = arith.subf %11, %0 : vector<8x256xf32>
    %13 = arith.mulf %12, %12 : vector<8x256xf32>
    %c0_2 = arith.constant 0 : index
    %c0_3 = arith.constant 0 : index
    %14 = vector.load %arg1[%c0_2, %c0_3] : memref<1x256xf32, #tpu.memory_space<vmem>>, vector<1x256xf32>
    %15 = vector.broadcast %14 : vector<1x256xf32> to vector<8x256xf32>
    %16 = arith.mulf %13, %15 : vector<8x256xf32>
    %cst_4 = arith.constant dense<0.000000e+00> : vector<256xf32>
    %17 = vector.multi_reduction <add>, %10, %cst_4 [0] : vector<8x256xf32> to vector<256xf32>
    %18 = vector.shape_cast %17 : vector<256xf32> to vector<1x256xf32>
    %cst_5 = arith.constant dense<0.000000e+00> : vector<1xf32>
    %19 = vector.multi_reduction <add>, %18, %cst_5 [1] : vector<1x256xf32> to vector<1xf32>
    %20 = vector.shape_cast %19 : vector<1xf32> to vector<1x1xf32>
    %cst_6 = arith.constant dense<0.000000e+00> : vector<256xf32>
    %21 = vector.multi_reduction <add>, %16, %cst_6 [0] : vector<8x256xf32> to vector<256xf32>
    %22 = vector.shape_cast %21 : vector<256xf32> to vector<1x256xf32>
    %cst_7 = arith.constant dense<0.000000e+00> : vector<1xf32>
    %23 = vector.multi_reduction <add>, %22, %cst_7 [1] : vector<1x256xf32> to vector<1xf32>
    %24 = vector.shape_cast %23 : vector<1xf32> to vector<1x1xf32>
    %25 = vector.shape_cast %20 : vector<1x1xf32> to vector<1x1x1xf32>
    %26 = vector.shape_cast %25 : vector<1x1x1xf32> to vector<1x1x1xf32>
    %27 = vector.broadcast %26 : vector<1x1x1xf32> to vector<1x8x128xf32>
    %c0_8 = arith.constant 0 : index
    %c0_9 = arith.constant 0 : index
    %c0_10 = arith.constant 0 : index
    %28 = vector.load %arg3[%c0_8, %c0_9, %c0_10] : memref<1x8x128xf32, #tpu.memory_space<vmem>>, vector<1x8x128xf32>
    tpu.vector_store %arg3[%c0_8, %c0_9, %c0_10], %27 {strides = array<i32>} : memref<1x8x128xf32, #tpu.memory_space<vmem>>, vector<1x8x128xf32>,
    %29 = vector.shape_cast %24 : vector<1x1xf32> to vector<1x1x1xf32>
    %30 = vector.shape_cast %29 : vector<1x1x1xf32> to vector<1x1x1xf32>
    %31 = vector.broadcast %30 : vector<1x1x1xf32> to vector<1x8x128xf32>
    %c0_11 = arith.constant 0 : index
    %c0_12 = arith.constant 0 : index
    %c0_13 = arith.constant 0 : index
    %32 = vector.load %arg4[%c0_11, %c0_12, %c0_13] : memref<1x8x128xf32, #tpu.memory_space<vmem>>, vector<1x8x128xf32>
    tpu.vector_store %arg4[%c0_11, %c0_12, %c0_13], %31 {strides = array<i32>} : memref<1x8x128xf32, #tpu.memory_space<vmem>>, vector<1x8x128xf32>,
    return
  }
  func.func @transform_0(%arg0: i32) -> (i32, i32) {
    %c0_i32 = arith.constant 0 : i32
    %c0_i32_0 = arith.constant 0 : i32
    %c0_i32_1 = arith.constant 0 : i32
    return %c0_i32, %c0_i32_0 : i32, i32
  }
  func.func @transform_1(%arg0: i32) -> (i32, i32) {
    %c0_i32 = arith.constant 0 : i32
    %c0_i32_0 = arith.constant 0 : i32
    return %arg0, %c0_i32 : i32, i32
  }
  func.func @transform_2(%arg0: i32) -> (i32, i32, i32) {
    %c0_i32 = arith.constant 0 : i32
    %c0_i32_0 = arith.constant 0 : i32
    %c0_i32_1 = arith.constant 0 : i32
    return %arg0, %c0_i32, %c0_i32_0 : i32, i32, i32
  }
  func.func @transform_3(%arg0: i32) -> (i32, i32, i32) {
    %c0_i32 = arith.constant 0 : i32
    %c0_i32_0 = arith.constant 0 : i32
    %c0_i32_1 = arith.constant 0 : i32
    return %arg0, %c0_i32, %c0_i32_0 : i32, i32, i32
  }
}

</mosaic_0001>

<bundles_post_ra>
// kernel: tpu_custom_call.1
= control target key start
LH: loop header
LB: loop body
LE: loop exit
PB: predicated region body
PF: predicated region fallthrough
CT: control target
= control target key end

     0   :  { %9 = vsyncpa [#allocation3], 0  ;;  %s333_s0 = inlined_call_operand.hbm [shape: f32[1,256], index: 0, kind: input, shape index: {}]   ;;  %s334_s1 = inlined_call_operand.hbm [shape: f32[8,256], index: 1, kind: input, shape index: {}]   ;;  %s335_s2 = inlined_call_operand.hbm [shape: f32[1,8,128], index: 2, kind: output, shape index: {0}]   ;;  %s336_s3 = inlined_call_operand.hbm [shape: f32[1,8,128], index: 3, kind: output, shape index: {1}]  }
   0x1   :  { %10 = vsyncpa [#allocation6], 0 }
   0x2   :  { %11 = vsyncpa [#allocation4], 0 }
   0x3   :  { %12 = vsyncpa [#allocation9], 0  ;;  %s252_s12 = smov [#allocation2]   ;;  %s253_s14 = smov [#allocation5]  }
   0x4   :  { %s19_s13 = sshll.u32 %s252_s12, 4  ;;  %s29_s15 = sshll.u32 %s253_s14, 4  ;;  %s20_s13 = int_to_ptr.vmem [resolvable:$true] %s19_s13  ;;  %s30_s15 = int_to_ptr.vmem [resolvable:$true] %s29_s15 }
   0x5   :  { %s156_s18 = scalar_lea.hbm %s333_s0, 32 }
   0x6   :  { %p157_p0 = scmp.ne.s32.totalorder %s333_s0, %s156_s18  ;;  %p160_p1 = scmp.lt.u32.totalorder %s156_s18, %s333_s0 }
   0x8   :  { %p162_p2 = pnand %p160_p1, %p157_p0 }
   0xa   :  { %165 = shalt.err (!%p162_p2)
}
   0xb   :  { %s166_s23 = scalar_lea.vmem %s20_s13, 32  ;;  %p171_p4 = scmp.lt.s32.totalorder %s20_s13, %s20_s13 }
   0xc   :  { %p167_p3 = scmp.ne.s32.totalorder %s20_s13, %s166_s23  ;;  %p172_p5 = scmp.lt.s32.totalorder %s166_s23, %s166_s23 }
   0xe   :  { %p173_p6 = por %p172_p5, %p171_p4 }
  0x10   :  { %p174_p7 = pnand %p173_p6, %p167_p3 }
  0x12   :  { %177 = shalt.err (!%p174_p7)
}
  0x13   :  { %22 = dma.hbm_to_vmem [thread:$0]  %s333_s0, 32, %s20_s13, [#allocation3]  }
  0x14   :  { %s178_s28 = scalar_lea.hbm %s334_s1, 256 }
  0x15   :  { %p179_p8 = scmp.ne.s32.totalorder %s334_s1, %s178_s28  ;;  %p182_p9 = scmp.lt.u32.totalorder %s178_s28, %s334_s1 }
  0x17   :  { %p184_p10 = pnand %p182_p9, %p179_p8 }
  0x19   :  { %187 = shalt.err (!%p184_p10)
}
  0x1a   :  { %s188_s6 = scalar_lea.vmem %s30_s15, 256  ;;  %p193_p12 = scmp.lt.s32.totalorder %s30_s15, %s30_s15 }
  0x1b   :  { %p189_p11 = scmp.ne.s32.totalorder %s30_s15, %s188_s6  ;;  %p194_p13 = scmp.lt.s32.totalorder %s188_s6, %s188_s6 }
  0x1d   :  { %p195_p0 = por %p194_p13, %p193_p12 }
  0x1f   :  { %p196_p1 = pnand %p195_p0, %p189_p11 }
  0x21   :  { %199 = shalt.err (!%p196_p1)
}
  0x22   :  { %32 = dma.hbm_to_vmem [thread:$0]  %s334_s1, 256, %s30_s15, [#allocation6]  }
  0x23   :  { %244 = dma.done.wait [#allocation3], 32  }
  0x24   :  { %245 = vsyncadd [#allocation3], 4294967264 }
  0x25   :  { %246 = dma.done.wait [#allocation6], 256  }
  0x26   :  { %247 = vsyncadd [#allocation6], 4294967040  ;;  %v39_v0 = vld [vmem:[#allocation5] sm:$0xff]  ;;  %s254_s8 = smov 112   ;;  %s255_s9 = smov 127   ;;  %v40_v1 = vld [vmem:[#allocation5 + $0x8] sm:$0xff]  ;;  %v41_v2 = vlaneseq }
  0x27   :  { %44 = vrot.lane.b32.xlu1 %v39_v0, %s254_s8  ;;  %63 = vrot.lane.b32.xlu0 %v39_v0, %s255_s9  ;;  %v74_v9 = vld [vmem:[#allocation2] sm:$0x3]  ;;  %s256_s1 = smov [#allocation7]   ;;  %s257_s11 = smov [#allocation8]  }
  0x28   :  { %v77_v3 = vshrl.u32 %v41_v2, 7  ;;  %v42_v4 = vand.u32 127, %v41_v2  ;;  %s126_s10 = sshll.u32 %s256_s1, 4  ;;  %s136_s12 = sshll.u32 %s257_s11, 4  ;;  %s127_s10 = int_to_ptr.vmem [resolvable:$true] %s126_s10  ;;  %s302_s12 = int_to_ptr.vmem [resolvable:$true] %s136_s12 }
  0x29   :  { %s200_s13 = scalar_lea.vmem %s127_s10, 128  ;;  %p205_p3 = scmp.lt.s32.totalorder %s127_s10, %s127_s10 }
  0x2a   :  { %v78_v7 = vsub.s32 0, %v77_v3  ;;  %v82_v8 = vsub.s32 1, %v77_v3  ;;  %vm48_vm0 = vcmp.lt.s32.totalorder %v42_v4, 112  ;;  %vm67_vm1 = vcmp.lt.s32.totalorder %v42_v4, 127  ;;  %p201_p2 = scmp.ne.s32.totalorder %s127_s10, %s200_s13  ;;  %p206_p4 = scmp.lt.s32.totalorder %s200_s13, %s200_s13 }
  0x2b   :  { %46 = vrot.lane.b32.xlu1 %v40_v1, %s254_s8  ;;  %65 = vrot.lane.b32.xlu0 %v40_v1, %s255_s9  ;;  %v43_v10 = vadd.s32 128, %v42_v4 }
  0x2c   :  { %v79_v12 = vrot.slane %v74_v9, %v78_v7  ;;  %v83_v13 = vrot.slane %v74_v9, %v82_v8  ;;  %p207_p5 = por %p206_p4, %p205_p3 }
  0x2d   :  { %vm54_vm2 = vcmp.lt.s32.totalorder %v43_v10, 240 }
  0x2e   :  { %p208_p6 = pnand %p207_p5, %p201_p2 }
  0x99   :  { %v45_v5 = vpop.permute.xlu1 %44  ;;  %v64_v6 = vpop.permute.xlu0 %63 }
  0x9d   :  { %v47_v11 = vpop.permute.xlu1 %46  ;;  %v66_v14 = vpop.permute.xlu0 %65 }
  0x9e   :  { %v49_v15 = vsel %vm48_vm0, %v45_v5, %v47_v11  ;;  %v50_v16 = vsel %vm48_vm0, %v47_v11, %v45_v5  ;;  %v68_v17 = vsel %vm67_vm1, %v64_v6, %v66_v14  ;;  %v69_v18 = vsel %vm67_vm1, %v66_v14, %v64_v6 }
  0x9f   :  { %v51_v19 = vsub.f32 %v49_v15, %v39_v0  ;;  %v52_v20 = vsub.f32 %v50_v16, %v40_v1  ;;  %v70_v21 = vsub.f32 %v68_v17, %v39_v0  ;;  %v71_v22 = vsub.f32 %v69_v18, %v40_v1 }
  0xa1   :  { %v55_v23 = vmul.f32 %v51_v19, %v51_v19  ;;  %v56_v24 = vmul.f32 %v52_v20, %v52_v20  ;;  %v72_v25 = vmul.f32 %v70_v21, %v70_v21  ;;  %v73_v26 = vmul.f32 %v71_v22, %v71_v22 }
  0xa3   :  { %v62_v27 = vsel %vm54_vm2, %v56_v24, 0.0  ;;  %v88_v28 = vrot.slane %v55_v23, 4  ;;  %v86_v29 = vmul.f32 %v79_v12, %v72_v25  ;;  %v87_v30 = vmul.f32 %v83_v13, %v73_v26 }
  0xa4   :  { %v94_v31 = vrot.slane %v62_v27, 4 }
  0xa5   :  { %v89_v32 = vadd.f32 %v88_v28, %v55_v23  ;;  %v103_v33 = vrot.slane %v86_v29, 4  ;;  %v109_v34 = vrot.slane %v87_v30, 4 }
  0xa6   :  { %v95_v35 = vadd.f32 %v94_v31, %v62_v27 }
  0xa7   :  { %v90_v36 = vrot.slane %v89_v32, 2  ;;  %v104_v37 = vadd.f32 %v103_v33, %v86_v29  ;;  %v110_v38 = vadd.f32 %v109_v34, %v87_v30 }
  0xa8   :  { %v96_v39 = vrot.slane %v95_v35, 2 }
  0xa9   :  { %v91_v40 = vadd.f32 %v90_v36, %v89_v32  ;;  %v105_v41 = vrot.slane %v104_v37, 2  ;;  %v111_v42 = vrot.slane %v110_v38, 2 }
  0xaa   :  { %v97_v43 = vadd.f32 %v96_v39, %v95_v35 }
  0xab   :  { %v92_v44 = vrot.slane %v91_v40, 1  ;;  %v106_v45 = vadd.f32 %v105_v41, %v104_v37  ;;  %v112_v46 = vadd.f32 %v111_v42, %v110_v38 }
  0xac   :  { %v98_v47 = vrot.slane %v97_v43, 1 }
  0xad   :  { %v93_v48 = vadd.f32 %v92_v44, %v91_v40  ;;  %v107_v49 = vrot.slane %v106_v45, 1  ;;  %v113_v50 = vrot.slane %v112_v46, 1 }
  0xae   :  { %v99_v51 = vadd.f32 %v98_v47, %v97_v43 }
  0xaf   :  { %v108_v52 = vadd.f32 %v107_v49, %v106_v45  ;;  %v114_v53 = vadd.f32 %v113_v50, %v112_v46 }
  0xb0   :  { %v100_v54 = vadd.f32 %v99_v51, %v93_v48 }
  0xb1   :  { %v115_v55 = vadd.f32 %v114_v53, %v108_v52 }
  0xb2   :  { %101 = vadd.xlane.f32.xlu0 %v100_v54 }
  0xb3   :  { %116 = vadd.xlane.f32.xlu1 %v115_v55 }
 0x13f   :  { %v102_v56 = vpop.xlane.xlu0 %101 }
 0x140   :  { %118 = vst [vmem:[#allocation7] sm:$0xff] %v102_v56  ;;  %v117_v57 = vpop.xlane.xlu1 %116 }
 0x141   :  { %119 = vst [vmem:[#allocation8] sm:$0xff] %v117_v57 }
 0x142   :  { %211 = shalt.err (!%p208_p6)
}
 0x143   :  { %s212_s16 = scalar_lea.hbm %s335_s2, 128 }
 0x144   :  { %p213_p7 = scmp.ne.s32.totalorder %s335_s2, %s212_s16  ;;  %p216_p8 = scmp.lt.u32.totalorder %s212_s16, %s335_s2 }
 0x146   :  { %p218_p9 = pnand %p216_p8, %p213_p7 }
 0x148   :  { %221 = shalt.err (!%p218_p9)
}
 0x149   :  { %129 = dma.vmem_to_hbm [thread:$0]  %s127_s10, 128, %s335_s2, [#allocation4]  }
 0x14a   :  { %s222_s23 = scalar_lea.vmem %s302_s12, 128  ;;  %p227_p11 = scmp.lt.s32.totalorder %s302_s12, %s302_s12 }
 0x14b   :  { %p223_p10 = scmp.ne.s32.totalorder %s302_s12, %s222_s23  ;;  %p228_p12 = scmp.lt.s32.totalorder %s222_s23, %s222_s23 }
 0x14d   :  { %p229_p13 = por %p228_p12, %p227_p11 }
 0x14f   :  { %p230_p0 = pnand %p229_p13, %p223_p10 }
 0x151   :  { %233 = shalt.err (!%p230_p0)
}
 0x152   :  { %s234_s26 = scalar_lea.hbm %s336_s3, 128 }
 0x153   :  { %p235_p1 = scmp.ne.s32.totalorder %s336_s3, %s234_s26  ;;  %p238_p2 = scmp.lt.u32.totalorder %s234_s26, %s336_s3 }
 0x155   :  { %p240_p3 = pnand %p238_p2, %p235_p1 }
 0x157   :  { %243 = shalt.err (!%p240_p3)
}
 0x158   :  { %139 = dma.vmem_to_hbm [thread:$0]  %s302_s12, 128, %s336_s3, [#allocation9]  }
 0x159   :  { %248 = dma.done.wait [#allocation4], 128  }
 0x15a   :  { %249 = vsyncadd [#allocation4], 4294967168 }
 0x15b   :  { %250 = dma.done.wait [#allocation9], 128  }
 0x15c   :  { %251 = vsyncadd [#allocation9], 4294967168 }
 0x15d   :  { %146 = vsyncpa [#allocation3], 1 }
 0x15e   :  { %147 = vsyncpa [#allocation6], 1 }
 0x15f   :  { %148 = vsyncpa [#allocation4], 1 }
 0x160   :  { %149 = vsyncpa [#allocation9], 1 }

</bundles_post_ra>
